<compile_context>
chip_gen: v7x
topology: tpu7x:2x2x1
jax: 0.10.0
libtpu: 0.0.40
codegen_flags: <defaults>
</compile_context>

<pallas_src>
import math

import jax
import jax.numpy as jnp
from jax import lax
from jax.experimental import pallas as pl
from jax.experimental.pallas import tpu as pltpu

_LANE = 128
_SUBLANE = 8


def _cdiv(a, b):
    return -(-a // b)


def _round_up(v, m):
    return _cdiv(v, m) * m


def _vmem_capacity_bytes():
    """Per-TensorCore VMEM capacity; conservative 64 MiB fallback (v7x size)."""
    cap = 64 * 1024 * 1024
    try:
        info = pltpu.get_tpu_info()
        cap = int(getattr(info, "vmem_capacity_bytes", cap)) or cap
    except Exception:
        pass
    return max(32 * 1024 * 1024, min(cap, 128 * 1024 * 1024))


def _bilinear_sigmoid_kernel(a_ref, b_ref, w_ref, bias_ref, o_ref):
    # a_ref: (TN, Da)   b_ref: (TN, Db)   w_ref: (Da, Db) resident in VMEM
    # bias_ref: (1, 1) in SMEM            o_ref: (1, TN) lane-dense
    # First contraction on the MXU in the inputs' native dtype, f32 accumulate.
    # HIGHEST keeps f32 inputs at full precision (multi-pass MXU) -- free here
    # since the kernel is HBM-bandwidth bound.
    t = jnp.dot(a_ref[...], w_ref[...],
                preferred_element_type=jnp.float32,
                precision=lax.Precision.HIGHEST)                # (TN, Db) f32
    p = t * b_ref[...].astype(jnp.float32)                      # VPU elementwise
    # Row sums emitted lane-dense: ones(1, Db) . P^T -> (1, TN).  A tiny MXU
    # contraction with a transposed RHS instead of a sublane-oriented (TN, 1)
    # reduce, so every output store is a full, unmasked (1, TN) vst.
    ones_row = jnp.ones((1, p.shape[1]), dtype=jnp.float32)
    s = lax.dot_general(ones_row, p,
                        dimension_numbers=(((1,), (1,)), ((), ())),
                        preferred_element_type=jnp.float32)     # (1, TN)
    s = s + bias_ref[0, 0]
    # Exact sigmoid via a single EUP tanh: sigmoid(x) = 0.5*(1 + tanh(x/2)).
    o_ref[...] = (0.5 * (1.0 + jnp.tanh(0.5 * s))).astype(o_ref.dtype)


def _pick_block_rows(n, da, db, in_itemsize, w_bytes, cap_bytes, requested=None):
    """Row tile (multiple of 128): big enough to amortize per-step overhead,
    small enough for >=2 grid steps (v7x megacore) and the VMEM budget, with
    lane-padded accounting of every in-kernel buffer."""
    da_p = _round_up(da, _LANE)
    db_p = _round_up(db, _LANE)

    # Lane-padded VMEM bytes per tile row:
    #   A,B input tiles, double-buffered        2*(da_p+db_p)*in_itemsize
    #   f32 intermediates t and p               2*db_p*4
    #   slack for MXU operand staging / f32-precision splits
    #                                           (da_p+db_p)*in_itemsize
    #   (1, TN) output block, double-buffered, 8-sublane padded
    #                                           2*8*4
    per_row = (3 * (da_p + db_p) * in_itemsize) + 2 * db_p * 4 + 2 * _SUBLANE * 4

    budget = (cap_bytes * 6) // 10 - w_bytes - (2 << 20)   # 60% of VMEM, minus W + margin
    cap_rows_vmem = max(_LANE, (max(budget, 0) // per_row) // _LANE * _LANE)

    # Target ~4 MiB of real HBM traffic per grid step (both inputs).
    target_rows = _round_up(_cdiv(4 << 20, max((da + db) * in_itemsize, 1)), _LANE)

    # Keep at least 2 grid steps so both v7x TensorCores get work.
    cap_rows_2steps = max(_LANE, _round_up(_cdiv(n, 2), _LANE))

    tn = requested if requested is not None else target_rows
    tn = max(_LANE, (tn // _LANE) * _LANE)                  # multiple of 128
    tn = min(tn, cap_rows_vmem, cap_rows_2steps, _round_up(n, _LANE))
    return max(_LANE, tn)


def discriminator_forward(x, y, weight, bias, *, block_rows=None):
    """x: (N, hid_dim), y: (N, emb_dim), weight: (1, hid_dim, emb_dim), bias: (1,)
    -> (N, 1) float32 sigmoid scores, matching nn.Bilinear(hid, emb, 1) + Sigmoid."""
    n, hid_dim = x.shape
    n_y, emb_dim = y.shape
    assert n == n_y
    w2d = weight.reshape(hid_dim, emb_dim)

    # Factor so the (TN, Dmin) intermediate is as narrow as possible:
    #   out = rowsum((A @ W') * B)  with  Dmin = min(hid_dim, emb_dim).
    # NOTE: the flipped path takes w2d.T -- a one-off copy of the small weight,
    # negligible next to the N*(hid+emb) input traffic.
    if emb_dim <= hid_dim:
        a, b, w = x, y, w2d                    # intermediate width = emb_dim
    else:
        a, b, w = y, x, w2d.T                  # intermediate width = hid_dim
    da, db = a.shape[1], b.shape[1]

    # Keep the MXU in the inputs' native dtype (bf16 stays bf16).
    if a.dtype == jnp.bfloat16 and b.dtype == jnp.bfloat16:
        w = w.astype(jnp.bfloat16)

    in_itemsize = jnp.dtype(a.dtype).itemsize
    w_bytes = _round_up(da, _SUBLANE) * _round_up(db, _LANE) * jnp.dtype(w.dtype).itemsize

    cap_bytes = _vmem_capacity_bytes()
    if n < _LANE:
        tn = n                                  # single block, exact fit
    else:
        tn = _pick_block_rows(n, da, db, in_itemsize, w_bytes, cap_bytes, block_rows)
    g = _cdiv(n, tn)
    # Output slab padded to whole blocks (every store unmasked & lane-dense).
    # The ragged edge INPUT block reads past row N: safe, because output column
    # n depends only on input row n, and columns >= N are sliced off below.
    n_out = g * tn

    bias_smem = bias.reshape(1, 1).astype(jnp.float32)

    out = pl.pallas_call(
        _bilinear_sigmoid_kernel,
        out_shape=jax.ShapeDtypeStruct((1, n_out), jnp.float32),
        grid=(g,),
        in_specs=[
            pl.BlockSpec((tn, da), lambda i: (i, 0)),   # A row tile (pipelined)
            pl.BlockSpec((tn, db), lambda i: (i, 0)),   # B row tile (pipelined)
            pl.BlockSpec(memory_space=pltpu.VMEM),      # W resident, single copy
            pl.BlockSpec(memory_space=pltpu.SMEM),      # bias scalar in SMEM
        ],
        out_specs=pl.BlockSpec((1, tn), lambda i: (0, i)),   # lane-dense scores
        compiler_params=pltpu.CompilerParams(
            dimension_semantics=("parallel",),
            vmem_limit_bytes=int(cap_bytes * 3 // 4),
        ),
    )(a, b, w, bias_smem)

    return out[0, :n].reshape(n, 1)


def _reference(x, y, weight, bias):
    # pure-JAX reference of nn.Bilinear(..., 1) + sigmoid (full-precision matmul)
    s = jnp.einsum("nh,ohe,ne->no", x, weight, y,
                   precision=lax.Precision.HIGHEST) + bias[None, :]
    return jax.nn.sigmoid(s)


if __name__ == "__main__":
    # Sigmoid is exact now; tolerance just leaves margin for backend matmul
    # precision-mode differences in the (1, Dmin)·P^T row-sum contraction.
    tol = 5e-3

    batch, emb_dim, hid_dim = 8, 16, 32
    key = jax.random.PRNGKey(0)
    kx, ky, kw, kb = jax.random.split(key, 4)

    x = jax.random.normal(kx, (batch, hid_dim), dtype=jnp.float32)
    y = jax.random.normal(ky, (batch, emb_dim), dtype=jnp.float32)
    bound = 1.0 / math.sqrt(hid_dim)   # nn.Bilinear default init range
    weight = jax.random.uniform(kw, (1, hid_dim, emb_dim),
                                minval=-bound, maxval=bound, dtype=jnp.float32)
    bias = jax.random.uniform(kb, (1,), minval=-bound, maxval=bound,
                              dtype=jnp.float32)

    out = jax.block_until_ready(discriminator_forward(x, y, weight, bias))
    ref = _reference(x, y, weight, bias)
    assert out.shape == (batch, 1)
    assert jnp.allclose(out, ref, atol=tol), (out, ref)

    # multi-tile path: grid > 1 with a ragged (unpadded) edge block
    kx2, ky2 = jax.random.split(jax.random.PRNGKey(1))
    batch2 = 300
    x2 = jax.random.normal(kx2, (batch2, hid_dim), dtype=jnp.float32)
    y2 = jax.random.normal(ky2, (batch2, emb_dim), dtype=jnp.float32)
    ref2 = _reference(x2, y2, weight, bias)

    out2 = jax.block_until_ready(discriminator_forward(x2, y2, weight, bias))
    assert out2.shape == (batch2, 1)
    assert jnp.allclose(out2, ref2, atol=tol)

    out2b = jax.block_until_ready(
        discriminator_forward(x2, y2, weight, bias, block_rows=128))  # 3 tiles
    assert jnp.allclose(out2b, ref2, atol=tol)

    # flipped factoring path (hid_dim < emb_dim)
    emb3, hid3 = 48, 16
    k3 = jax.random.split(jax.random.PRNGKey(2), 4)
    x3 = jax.random.normal(k3[0], (batch, hid3), dtype=jnp.float32)
    y3 = jax.random.normal(k3[1], (batch, emb3), dtype=jnp.float32)
    b3 = 1.0 / math.sqrt(hid3)
    w3 = jax.random.uniform(k3[2], (1, hid3, emb3), minval=-b3, maxval=b3,
                            dtype=jnp.float32)
    bias3 = jax.random.uniform(k3[3], (1,), minval=-b3, maxval=b3,
                               dtype=jnp.float32)
    out3 = jax.block_until_ready(discriminator_forward(x3, y3, w3, bias3))
    ref3 = _reference(x3, y3, w3, bias3)
    assert out3.shape == (batch, 1)
    assert jnp.allclose(out3, ref3, atol=tol)

    print("KERNEL_OK")
</pallas_src>

<mosaic_0001>
module attributes {stable_mosaic.version = 11 : i64} {
  func.func @_bilinear_sigmoid_kernel(%arg0: i32, %arg1: memref<8x32xf32, #tpu.memory_space<vmem>>, %arg2: memref<8x16xf32, #tpu.memory_space<vmem>>, %arg3: memref<32x16xf32, #tpu.memory_space<vmem>>, %arg4: memref<1x1xf32, #tpu.memory_space<smem>>, %arg5: memref<1x8xf32, #tpu.memory_space<vmem>>) attributes {dimension_semantics = [#tpu.dimension_semantics<parallel>], iteration_bounds = array<i64: 1>, scalar_prefetch = 0 : i64, scratch_operands = 0 : i64, tpu.core_type = #tpu.core_type<tc>, window_params = [{transform_indices = @transform_0, window_bounds = array<i64: 8, 32>}, {transform_indices = @transform_1, window_bounds = array<i64: 8, 16>}, {pipeline_mode = #tpu.pipeline_mode<synchronous>, transform_indices = @transform_2, window_bounds = array<i64: 32, 16>}, {transform_indices = @transform_3, window_bounds = array<i64: 1, 1>}, {transform_indices = @transform_4, window_bounds = array<i64: 1, 8>}]} {
    %c0 = arith.constant 0 : index
    %c0_0 = arith.constant 0 : index
    %0 = vector.load %arg1[%c0, %c0_0] : memref<8x32xf32, #tpu.memory_space<vmem>>, vector<8x32xf32>
    %c0_1 = arith.constant 0 : index
    %c0_2 = arith.constant 0 : index
    %1 = vector.load %arg3[%c0_1, %c0_2] : memref<32x16xf32, #tpu.memory_space<vmem>>, vector<32x16xf32>
    %cst = arith.constant dense<0.000000e+00> : vector<8x16xf32>
    %2 = tpu.matmul %0, %1, %cst {dimension_numbers = #tpu.dot_dimension_numbers<[1], [0], [0], [1], [0, 0, 1, 1], [], []>, precision = #tpu.contract_precision<fp32>} : vector<8x32xf32>, vector<32x16xf32>, vector<8x16xf32> -> vector<8x16xf32>
    %c0_3 = arith.constant 0 : index
    %c0_4 = arith.constant 0 : index
    %3 = vector.load %arg2[%c0_3, %c0_4] : memref<8x16xf32, #tpu.memory_space<vmem>>, vector<8x16xf32>
    %4 = arith.mulf %2, %3 : vector<8x16xf32>
    %cst_5 = arith.constant 1.000000e+00 : f32
    %5 = vector.broadcast %cst_5 : f32 to vector<1x16xf32>
    %cst_6 = arith.constant dense<0.000000e+00> : vector<1x8xf32>
    %6 = tpu.matmul %5, %4, %cst_6 {dimension_numbers = #tpu.dot_dimension_numbers<[1], [1], [0], [0], [0, 0, 1, 0], [], []>} : vector<1x16xf32>, vector<8x16xf32>, vector<1x8xf32> -> vector<1x8xf32>
    %c0_7 = arith.constant 0 : index
    %c0_8 = arith.constant 0 : index
    %7 = memref.load %arg4[%c0_7, %c0_8] : memref<1x1xf32, #tpu.memory_space<smem>>
    %8 = vector.broadcast %7 : f32 to vector<1x8xf32>
    %9 = arith.addf %6, %8 : vector<1x8xf32>
    %cst_9 = arith.constant 5.000000e-01 : f32
    %10 = vector.broadcast %cst_9 : f32 to vector<1x8xf32>
    %11 = arith.mulf %10, %9 : vector<1x8xf32>
    %12 = math.tanh %11 : vector<1x8xf32>
    %cst_10 = arith.constant 1.000000e+00 : f32
    %13 = vector.broadcast %cst_10 : f32 to vector<1x8xf32>
    %14 = arith.addf %13, %12 : vector<1x8xf32>
    %cst_11 = arith.constant 5.000000e-01 : f32
    %15 = vector.broadcast %cst_11 : f32 to vector<1x8xf32>
    %16 = arith.mulf %15, %14 : vector<1x8xf32>
    %c0_12 = arith.constant 0 : index
    %c0_13 = arith.constant 0 : index
    %17 = vector.load %arg5[%c0_12, %c0_13] : memref<1x8xf32, #tpu.memory_space<vmem>>, vector<1x8xf32>
    tpu.vector_store %arg5[%c0_12, %c0_13], %16 {strides = array<i32>} : memref<1x8xf32, #tpu.memory_space<vmem>>, vector<1x8xf32>,
    return
  }
  func.func @transform_0(%arg0: i32) -> (i32, i32) {
    %c0_i32 = arith.constant 0 : i32
    %c0_i32_0 = arith.constant 0 : i32
    return %arg0, %c0_i32 : i32, i32
  }
  func.func @transform_1(%arg0: i32) -> (i32, i32) {
    %c0_i32 = arith.constant 0 : i32
    %c0_i32_0 = arith.constant 0 : i32
    return %arg0, %c0_i32 : i32, i32
  }
  func.func @transform_2(%arg0: i32) -> (i32, i32) {
    %c0_i32 = arith.constant 0 : i32
    %c0_i32_0 = arith.constant 0 : i32
    %c0_i32_1 = arith.constant 0 : i32
    return %c0_i32, %c0_i32_0 : i32, i32
  }
  func.func @transform_3(%arg0: i32) -> (i32, i32) {
    %c0_i32 = arith.constant 0 : i32
    %c0_i32_0 = arith.constant 0 : i32
    %c0_i32_1 = arith.constant 0 : i32
    return %c0_i32, %c0_i32_0 : i32, i32
  }
  func.func @transform_4(%arg0: i32) -> (i32, i32) {
    %c0_i32 = arith.constant 0 : i32
    %c0_i32_0 = arith.constant 0 : i32
    return %c0_i32, %arg0 : i32, i32
  }
}

</mosaic_0001>

<bundles_post_ra>
// kernel: tpu_custom_call.1
= control target key start
LH: loop header
LB: loop body
LE: loop exit
PB: predicated region body
PF: predicated region fallthrough
CT: control target
= control target key end

     0   :  { %v795_v3 = vmov 0.0|0.0   ;;  %vm24_vm0 = vcmask 261120   ;;  %vm796_vm1 = vmmov 0   ;;  %v797_v10 = vmov 0.0   ;;  %s885_s0 = inlined_call_operand.vmem [shape: f32[8,32], index: 0, kind: input, shape index: {}]   ;;  %s886_s1 = inlined_call_operand.vmem [shape: f32[8,16], index: 1, kind: input, shape index: {}]   ;;  %s887_s2 = inlined_call_operand.vmem [shape: f32[32,16], index: 2, kind: input, shape index: {}]   ;;  %s888_s3 = inlined_call_operand.<no memory space> [shape: f32[1,1], index: 3, kind: input, shape index: {}]   ;;  %s889_s4 = inlined_call_operand.hbm [shape: f32[1,8], index: 4, kind: output, shape index: {}]  }
   0x1   :  { %v20_v0 = vld [vmem:[%s887_s2] sm:$0xff]  ;;  %v21_v1 = vld [vmem:[%s887_s2 + $0x8] sm:$0xff]  ;;  %v22_v2 = vld [vmem:[%s887_s2 + $0x10] sm:$0xff]  ;;  %719 = vmatprep.subr.bf16.mxu1 %v795_v3  ;;  %737 = vmatprep.subr.bf16.mxu0 %v795_v3 }
   0x2   :  { %v29_v4 = vand.u32 4294901760, %v20_v0  ;;  %v32_v5 = vand.u32 4294901760, %v21_v1  ;;  %v23_v6 = vld [vmem:[%s887_s2 + $0x18] sm:$0xff]  ;;  %v35_v7 = vand.u32 4294901760, %v22_v2  ;;  %v19_v8 = vld [vmem:[%s885_s0] sm:$0xff]  ;;  %656 = vmatprep.mubr.msk.f32.mxu1 %vm796_vm1, %v797_v10  ;;  %689 = vmatprep.mubr.msk.f32.mxu0 %vm796_vm1, %v797_v10 }
   0x3   :  { %v38_v9 = vand.u32 4294901760, %v23_v6  ;;  %v26_v11 = vsel %vm24_vm0, %v19_v8, 0 }
   0x4   :  { %10 = vsyncpa [#allocation4], 0  ;;  %v720_v12 = vpack.c.bf16 %v32_v5, %v29_v4  ;;  %v109_v13 = vsub.f32 %v20_v0, %v29_v4  ;;  %v116_v14 = vsub.f32 %v21_v1, %v32_v5  ;;  %v123_v15 = vsub.f32 %v22_v2, %v35_v7  ;;  %v513_v44 = vld [vmem:[%s886_s1] sm:$0xff]  ;;  %s799_s27 = smov [#allocation3]  }
   0x5   :  { %v130_v16 = vsub.f32 %v23_v6, %v38_v9  ;;  %v97_v17 = vand.u32 4294901760, %v26_v11  ;;  %v723_v18 = vpack.c.bf16 %v38_v9, %v35_v7  ;;  %vm517_vm2 = vcmask 130048   ;;  %s606_s28 = sshll.u32 %s799_s27, 4  ;;  %s607_s28 = int_to_ptr.vmem [resolvable:$true] %s606_s28 }
   0x6   :  { %721 = vmatpush3.bf16.msra.mxu1 %v720_v12  ;;  %739 = vmatpush3.bf16.msra.mxu0 %v720_v12  ;;  %v110_v19 = vand.u32 4294901760, %v109_v13  ;;  %v117_v20 = vand.u32 4294901760, %v116_v14  ;;  %v124_v21 = vand.u32 4294901760, %v123_v15  ;;  %v732_v39 = vpack.c.bf16 %v116_v14, %v109_v13  ;;  %s771_s1 = scalar_lea.vmem %s607_s28, 16  ;;  %s775_s29 = scalar_lea.vmem %s607_s28, 32 }
   0x7   :  { %722 = vmatprep.subr.bf16.mxu1 %v795_v3  ;;  %740 = vmatprep.subr.bf16.mxu0 %v795_v3  ;;  %v98_v22 = vsub.f32 %v26_v11, %v97_v17  ;;  %v131_v23 = vand.u32 4294901760, %v130_v16  ;;  %v735_v40 = vpack.c.bf16 %v130_v16, %v123_v15  ;;  %v798_v48 = vmov 1.0   ;;  %p772_p0 = scmp.ne.s32.totalorder %s607_s28, %s771_s1  ;;  %p776_p1 = scmp.lt.s32.totalorder %s607_s28, %s607_s28 }
   0x8   :  { %v111_v24 = vsub.f32 %v109_v13, %v110_v19  ;;  %v118_v25 = vsub.f32 %v116_v14, %v117_v20  ;;  %v125_v26 = vsub.f32 %v123_v15, %v124_v21  ;;  %v744_v31 = vpack.c.bf16 %v117_v20, %v110_v19  ;;  %p777_p2 = scmp.lt.s32.totalorder %s775_s29, %s771_s1 }
   0x9   :  { %v99_v27 = vand.u32 4294901760, %v98_v22  ;;  %v132_v28 = vsub.f32 %v130_v16, %v131_v23  ;;  %v747_v37 = vpack.c.bf16 %v131_v23, %v124_v21  ;;  %v516_v49 = vstv %s888_s3 }
   0xa   :  { %724 = vmatpush3.bf16.msra.mxu1 %v723_v18  ;;  %742 = vmatpush3.bf16.msra.mxu0 %v723_v18  ;;  %v112_v29 = vand.u32 4294901760, %v111_v24  ;;  %v119_v30 = vand.u32 4294901760, %v118_v25  ;;  %v126_v34 = vand.u32 4294901760, %v125_v26  ;;  %vm598_vm3 = vcmask 57344   ;;  %p778_p3 = por %p777_p2, %p776_p1 }
   0xb   :  { %v100_v32 = vsub.f32 %v98_v22, %v99_v27  ;;  %725 = vmatprep.subr.bf16.mxu1 %v795_v3  ;;  %743 = vmatprep.subr.bf16.mxu0 %v795_v3  ;;  %v133_v35 = vand.u32 4294901760, %v132_v28 }
   0xc   :  { %v726_v33 = vpack.c.bf16 %v119_v30, %v112_v29  ;;  %p779_p4 = pnand %p778_p3, %p772_p0 }
   0xd   :  { %v101_v36 = vand.u32 4294901760, %v100_v32  ;;  %690 = vmatmul.mubr.f32.vlgmr.msra.gmra.mrb[0].mxu0 %v99_v27  ;;  %v729_v38 = vpack.c.bf16 %v133_v35, %v126_v34 }
   0xe   :  { %745 = vmatpush3.bf16.msra.mxu0 %v744_v31  ;;  %700 = vmatprep.mubr.msk.f32.mxu0 %vm796_vm1, %v797_v10 }
   0xf   :  { %657 = vmatmul.mubr.f32.vlgmr.msra.gmra.mrb[0].mxu1 %v101_v36  ;;  %746 = vmatprep.subr.bf16.mxu0 %v795_v3 }
  0x10   :  { %727 = vmatpush3.bf16.msra.mxu1 %v726_v33  ;;  %667 = vmatprep.mubr.msk.f32.mxu1 %vm796_vm1, %v797_v10 }
  0x11   :  { %728 = vmatprep.subr.bf16.mxu1 %v795_v3 }
  0x12   :  { %748 = vmatpush3.bf16.msra.mxu0 %v747_v37 }
  0x13   :  { %749 = vmatprep.subr.bf16.mxu0 %v795_v3 }
  0x14   :  { %730 = vmatpush3.bf16.msra.mxu1 %v729_v38 }
  0x15   :  { %731 = vmatprep.subr.bf16.mxu1 %v795_v3  ;;  %701 = vmatmul.mubr.f32.vlgmr.msra.gmra.mrb[0].mxu0 %v97_v17 }
  0x16   :  { %751 = vmatpush3.bf16.msra.mxu0 %v720_v12  ;;  %711 = vmatprep.mubr.msk.f32.mxu0 %vm796_vm1, %v797_v10 }
  0x17   :  { %668 = vmatmul.mubr.f32.vlgmr.msra.gmra.mrb[0].mxu1 %v97_v17  ;;  %752 = vmatprep.subr.bf16.mxu0 %v795_v3 }
  0x18   :  { %733 = vmatpush3.bf16.msra.mxu1 %v732_v39  ;;  %678 = vmatprep.mubr.msk.f32.mxu1 %vm796_vm1, %v797_v10 }
  0x19   :  { %734 = vmatprep.subr.bf16.mxu1 %v795_v3 }
  0x1a   :  { %754 = vmatpush3.bf16.msra.mxu0 %v723_v18 }
  0x1c   :  { %736 = vmatpush3.bf16.msra.mxu1 %v735_v40 }
  0x1d   :  { %712 = vmatmul.mubr.f32.vlgmr.msra.gmra.mrb[0].mxu0 %v97_v17  ;;  %714 = vmatprep.subr.mxu1 %v797_v10 }
  0x1f   :  { %679 = vmatmul.mubr.f32.vlgmr.msra.gmra.mrb[0].mxu1 %v98_v22 }
  0x20   :  { %716 = vmatprep.mubr.msk.f32.mxu1 %vm796_vm1, %v797_v10 }
  0xf0   :  { %v509_v41 = vpop.f32.mrb[0].mxu0 }
  0xf1   :  { %v713_v42 = vpop.f32.mrb[1].mxu0 }
  0xf2   :  { %v274_v43 = vpop.f32.mrb[0].mxu1 }
  0xf3   :  { %v755_v45 = vadd.f32 %v509_v41, %v274_v43  ;;  %v680_v46 = vpop.f32.mrb[1].mxu1 }
  0xf5   :  { %v514_v47 = vmul.f32 %v755_v45, %v513_v44 }
  0xf7   :  { %715 = vmatpush3.xpose.msk.msra.mxu1 %vm517_vm2, %v514_v47 }
  0xfa   :  { %717 = vmatmul.mubr.msk.f32.vlgmr.msra.gmra.mrb[2].mxu1 %vm517_vm2, %v798_v48 }
 0x1cd   :  { %v590_v50 = vpop.f32.mrb[2].mxu1 }
 0x1ce   :  { %v591_v51 = vadd.f32 %v590_v50, %v516_v49  ;;  %v718_v52 = vpop.f32.mrb[3].mxu1 }
 0x1d0   :  { %v594_v53 = vmul.f32 0.5, %v591_v51 }
 0x1d2   :  { %769 = vtanh.f32 %v594_v53 }
 0x1dc   :  { %v770_v54 = vpop.eup %769 }
 0x1dd   :  { %v596_v55 = vadd.f32 1.0, %v770_v54 }
 0x1df   :  { %v597_v56 = vmul.f32 0.5, %v596_v55 }
 0x1e1   :  { %599 = vst.msk [vmem:[#allocation3] sm:$0x1] %vm598_vm3, %v597_v56 }
 0x1e2   :  { %782 = shalt.err (!%p779_p4)
}
 0x1e3   :  { %s783_s5 = scalar_lea.hbm %s889_s4, 16 }
 0x1e4   :  { %p784_p5 = scmp.ne.s32.totalorder %s889_s4, %s783_s5  ;;  %p787_p6 = scmp.lt.u32.totalorder %s783_s5, %s889_s4 }
 0x1e6   :  { %p789_p7 = pnand %p787_p6, %p784_p5 }
 0x1e8   :  { %792 = shalt.err (!%p789_p7)
}
 0x1e9   :  { %609 = dma.vmem_to_hbm [thread:$0]  %s607_s28, 16, %s889_s4, [#allocation4]  }
 0x1ea   :  { %793 = dma.done.wait [#allocation4], 16  }
 0x1eb   :  { %794 = vsyncadd [#allocation4], 4294967280 }
 0x1ec   :  { %613 = vsyncpa [#allocation4], 1 }

</bundles_post_ra>
